<compile_context>
chip_gen: v7x
topology: tpu7x:2x2x1
jax: 0.10.0
libtpu: 0.0.40
codegen_flags: <defaults>
</compile_context>

<pallas_src>
import numpy as np
import jax
import jax.numpy as jnp
from jax import lax
from jax.experimental import pallas as pl
from jax.experimental.pallas import tpu as pltpu


_VALID_BORDERS = ("reflect", "replicate", "circular", "constant")
_BORDER_TO_NUMPY_PAD = {"reflect": "reflect", "replicate": "edge",
                        "circular": "wrap", "constant": "constant"}


def _laplacian_kernel2d(kernel_size: int, normalized: bool) -> np.ndarray:
    k = np.ones((kernel_size, kernel_size), dtype=np.float64)
    mid = kernel_size // 2
    k[mid, mid] = 1.0 - float(kernel_size ** 2)
    if normalized:
        k = k / np.abs(k).sum()
    return k.astype(np.float32)


def _vmem_limit_bytes() -> int:
    """Per-core VMEM limit: ~75% of detected capacity, capped at 100 MiB."""
    try:
        cap = int(pltpu.get_tpu_info().vmem_capacity_bytes)
    except Exception:
        cap = 64 * 1024 * 1024            # conservative (v7x per-core) fallback
    return min(100 * 1024 * 1024, (cap * 3) // 4)


def _pick_block_planes(n_planes, H, W, pad, in_bytes, out_bytes, budget_bytes):
    """Number of (H,W) planes per grid step, sized against a VMEM budget."""
    Hp, Wp = H + 2 * pad, W + 2 * pad
    per_plane = (2 * H * W * in_bytes             # double-buffered input block
                 + 2 * H * W * out_bytes          # double-buffered output block
                 + 4 * (3 * H * W + 2 * H * Wp + 2 * Hp * W))  # f32 temporaries
    tb = max(1, min(n_planes, budget_bytes // per_plane))
    # keep >= 4 grid steps (>= 2 per v7x TensorCore) when possible so the
    # input/output DMA pipelines stay double-buffered on both cores.
    if n_planes >= 4:
        tb = min(tb, -(-n_planes // 4))
    elif n_planes >= 2:
        tb = min(tb, -(-n_planes // 2))
    return int(tb)


def _pad_axis(arr, p, axis, size, mode):
    """Concatenate `p` border slices on each side of `arr` along `axis`
    (one batched concat per axis instead of per-row/column halo stores)."""
    def take(i, n=1):
        return lax.slice_in_dim(arr, i, i + n, axis=axis)

    if mode == "constant":
        shp = list(arr.shape)
        shp[axis] = p
        z = jnp.zeros(shp, arr.dtype)
        lo, hi = [z], [z]
    elif mode == "replicate":
        lo = [take(0)] * p
        hi = [take(size - 1)] * p
    elif mode == "circular":
        lo = [take(size - p, p)]
        hi = [take(0, p)]
    else:  # reflect
        lo = [take(p - t) for t in range(p)]           # indices p, p-1, ..., 1
        hi = [take(size - 2 - t) for t in range(p)]    # size-2, ..., size-1-p
    return jnp.concatenate(lo + [arr] + hi, axis=axis)


def _box_sum(xpad, K, axis, out_len):
    """Sum of K consecutive elements along `axis`; xpad extent = out_len+K-1."""
    if K <= 6:
        acc = lax.slice_in_dim(xpad, 0, out_len, axis=axis)
        for d in range(1, K):
            acc = acc + lax.slice_in_dim(xpad, d, d + out_len, axis=axis)
        return acc
    # O(log K) shift-doubling partial sums for large kernels.
    runs, acc, off, bit = xpad, None, 0, 0
    while (1 << bit) <= K:
        if K & (1 << bit):
            piece = lax.slice_in_dim(runs, off, off + out_len, axis=axis)
            acc = piece if acc is None else acc + piece
            off += 1 << bit
        if (1 << (bit + 1)) <= K:
            cur = runs.shape[axis]
            step = 1 << bit
            runs = (lax.slice_in_dim(runs, 0, cur - step, axis=axis)
                    + lax.slice_in_dim(runs, step, cur, axis=axis))
        bit += 1
    return acc


def laplacian_pallas(x: jax.Array,
                     kernel_size: int,
                     border_type: str = "reflect",
                     normalized: bool = True) -> jax.Array:
    """Laplacian filter. x: (B, C, H, W)."""
    assert x.ndim == 4, "expected NCHW input"
    assert kernel_size >= 3 and kernel_size % 2 == 1, \
        "kernel_size must be an odd integer >= 3"
    assert border_type in _VALID_BORDERS, border_type
    B, C, H, W = x.shape
    pad = kernel_size // 2
    assert pad < H and pad < W, "kernel_size too large for the spatial dims"

    kcoef = _laplacian_kernel2d(kernel_size, normalized)
    mid = kernel_size // 2
    w_off = float(kcoef[0, 0])           # shared off-center weight
    w_c = float(kcoef[mid, mid])         # center weight

    N = B * C
    x_flat = x.reshape(N, H, W)
    K = kernel_size
    border = border_type

    vmem_limit = _vmem_limit_bytes()
    TB = _pick_block_planes(N, H, W, pad, x.dtype.itemsize, x.dtype.itemsize,
                            budget_bytes=(vmem_limit * 3) // 5)
    n_blocks = pl.cdiv(N, TB)

    def conv_kernel(x_ref, o_ref):
        # x_ref / o_ref: (TB, H, W) plane blocks.
        x_blk = x_ref[...].astype(jnp.float32)                     # cast once
        # separable pad + K-wide box-sum: W axis, then H axis (padding commutes
        # with the per-row box-sum for all four border modes).
        xw = _pad_axis(x_blk, pad, axis=2, size=W, mode=border)    # (TB,H,W+2p)
        sw = _box_sum(xw, K, axis=2, out_len=W)                    # (TB,H,W)
        swh = _pad_axis(sw, pad, axis=1, size=H, mode=border)      # (TB,H+2p,W)
        s = _box_sum(swh, K, axis=1, out_len=H)                    # (TB,H,W)
        # factored weights: every off-center tap shares w_off, so
        #   out = w_off * box_sum + (w_c - w_off) * center
        center = x_ref[...].astype(jnp.float32)    # re-read: x_blk can die early
        o_ref[...] = (w_off * s + (w_c - w_off) * center).astype(o_ref.dtype)

    out_flat = pl.pallas_call(
        conv_kernel,
        out_shape=jax.ShapeDtypeStruct((N, H, W), x.dtype),
        grid_spec=pltpu.PrefetchScalarGridSpec(
            num_scalar_prefetch=0,
            grid=(n_blocks,),
            in_specs=[pl.BlockSpec((TB, H, W), lambda i: (i, 0, 0))],
            out_specs=pl.BlockSpec((TB, H, W), lambda i: (i, 0, 0)),
        ),
        compiler_params=pltpu.CompilerParams(
            dimension_semantics=("parallel",),
            vmem_limit_bytes=vmem_limit),
    )(x_flat)

    return out_flat.reshape(B, C, H, W)


class Laplacian:
    """Mirror of kornia Laplacian module (forward only)."""

    def __init__(self, kernel_size: int, border_type: str = "reflect",
                 normalized: bool = True) -> None:
        self.kernel_size = kernel_size
        self.border_type = border_type
        self.normalized = normalized

    def __call__(self, x: jax.Array) -> jax.Array:
        return laplacian_pallas(x, self.kernel_size, self.border_type,
                                self.normalized)


def _reference_laplacian(x, kernel_size, border_type, normalized):
    """Pure-JAX reference (depthwise correlation) for a sanity check."""
    B, C, H, W = x.shape
    k = jnp.asarray(_laplacian_kernel2d(kernel_size, normalized))
    pad = kernel_size // 2
    mode = _BORDER_TO_NUMPY_PAD[border_type]
    pw = ((0, 0), (0, 0), (pad, pad), (pad, pad))
    if mode == "constant":
        xp = jnp.pad(x, pw, mode="constant", constant_values=0)
    else:
        xp = jnp.pad(x, pw, mode=mode)
    out = jnp.zeros(x.shape, jnp.float32)
    for di in range(kernel_size):
        for dj in range(kernel_size):
            out = out + k[di, dj] * xp[:, :, di:di + H, dj:dj + W].astype(jnp.float32)
    return out.astype(x.dtype)


if __name__ == "__main__":
    key = jax.random.PRNGKey(0)
    B, C, H, W = 2, 4, 16, 16
    x = jax.random.uniform(key, (B, C, H, W), dtype=jnp.float32)

    def check(inp, ks, border, norm):
        y = Laplacian(ks, border, norm)(inp)
        jax.block_until_ready(y)
        assert y.shape == inp.shape, y.shape
        y_ref = _reference_laplacian(inp, ks, border, norm)
        np.testing.assert_allclose(np.asarray(y), np.asarray(y_ref),
                                   rtol=1e-5, atol=1e-5)

    # k=3, reflect (kornia default config)
    check(x, 3, "reflect", True)
    # k=5, replicate (pad=2 path)
    check(x, 5, "replicate", True)
    # k=7, circular (exercises the log-doubling box-sum)
    check(x, 7, "circular", True)
    # k=3, constant (zero halos)
    check(x, 3, "constant", True)
    # non-divisor plane count -> partial (masked) last block in the cdiv grid
    x_odd = jax.random.uniform(jax.random.PRNGKey(1), (1, 5, 16, 16),
                               dtype=jnp.float32)
    check(x_odd, 3, "reflect", True)

    print("KERNEL_OK")
</pallas_src>

<mosaic_0001>
module attributes {stable_mosaic.version = 11 : i64} {
  func.func @conv_kernel(%arg0: i32, %arg1: memref<2x16x16xf32, #tpu.memory_space<vmem>>, %arg2: memref<2x16x16xf32, #tpu.memory_space<vmem>>) attributes {dimension_semantics = [#tpu.dimension_semantics<parallel>], iteration_bounds = array<i64: 4>, scalar_prefetch = 0 : i64, scratch_operands = 0 : i64, tpu.core_type = #tpu.core_type<tc>, window_params = [{transform_indices = @transform_0, window_bounds = array<i64: 2, 16, 16>}, {transform_indices = @transform_1, window_bounds = array<i64: 2, 16, 16>}]} {
    %c0 = arith.constant 0 : index
    %c0_0 = arith.constant 0 : index
    %c0_1 = arith.constant 0 : index
    %0 = vector.load %arg1[%c0, %c0_0, %c0_1] : memref<2x16x16xf32, #tpu.memory_space<vmem>>, vector<2x16x16xf32>
    %1 = vector.extract_strided_slice %0 {offsets = [0, 0, 1], sizes = [2, 16, 1], strides = [1, 1, 1]} : vector<2x16x16xf32> to vector<2x16x1xf32>
    %2 = vector.extract_strided_slice %0 {offsets = [0, 0, 14], sizes = [2, 16, 1], strides = [1, 1, 1]} : vector<2x16x16xf32> to vector<2x16x1xf32>
    %3 = tpu.concatenate %1, %0, %2 in 2 : vector<2x16x1xf32>, vector<2x16x16xf32>, vector<2x16x1xf32> -> vector<2x16x18xf32>
    %4 = vector.extract_strided_slice %3 {offsets = [0, 0, 0], sizes = [2, 16, 16], strides = [1, 1, 1]} : vector<2x16x18xf32> to vector<2x16x16xf32>
    %5 = vector.extract_strided_slice %3 {offsets = [0, 0, 1], sizes = [2, 16, 16], strides = [1, 1, 1]} : vector<2x16x18xf32> to vector<2x16x16xf32>
    %6 = arith.addf %4, %5 : vector<2x16x16xf32>
    %7 = vector.extract_strided_slice %3 {offsets = [0, 0, 2], sizes = [2, 16, 16], strides = [1, 1, 1]} : vector<2x16x18xf32> to vector<2x16x16xf32>
    %8 = arith.addf %6, %7 : vector<2x16x16xf32>
    %9 = vector.extract_strided_slice %8 {offsets = [0, 1, 0], sizes = [2, 1, 16], strides = [1, 1, 1]} : vector<2x16x16xf32> to vector<2x1x16xf32>
    %10 = vector.extract_strided_slice %8 {offsets = [0, 14, 0], sizes = [2, 1, 16], strides = [1, 1, 1]} : vector<2x16x16xf32> to vector<2x1x16xf32>
    %11 = tpu.concatenate %9, %8, %10 in 1 : vector<2x1x16xf32>, vector<2x16x16xf32>, vector<2x1x16xf32> -> vector<2x18x16xf32>
    %12 = vector.extract_strided_slice %11 {offsets = [0, 0, 0], sizes = [2, 16, 16], strides = [1, 1, 1]} : vector<2x18x16xf32> to vector<2x16x16xf32>
    %13 = vector.extract_strided_slice %11 {offsets = [0, 1, 0], sizes = [2, 16, 16], strides = [1, 1, 1]} : vector<2x18x16xf32> to vector<2x16x16xf32>
    %14 = arith.addf %12, %13 : vector<2x16x16xf32>
    %15 = vector.extract_strided_slice %11 {offsets = [0, 2, 0], sizes = [2, 16, 16], strides = [1, 1, 1]} : vector<2x18x16xf32> to vector<2x16x16xf32>
    %16 = arith.addf %14, %15 : vector<2x16x16xf32>
    %c0_2 = arith.constant 0 : index
    %c0_3 = arith.constant 0 : index
    %c0_4 = arith.constant 0 : index
    %17 = vector.load %arg1[%c0_2, %c0_3, %c0_4] : memref<2x16x16xf32, #tpu.memory_space<vmem>>, vector<2x16x16xf32>
    %cst = arith.constant 6.250000e-02 : f32
    %18 = vector.broadcast %cst : f32 to vector<2x16x16xf32>
    %19 = arith.mulf %18, %16 : vector<2x16x16xf32>
    %cst_5 = arith.constant -5.625000e-01 : f32
    %20 = vector.broadcast %cst_5 : f32 to vector<2x16x16xf32>
    %21 = arith.mulf %20, %17 : vector<2x16x16xf32>
    %22 = arith.addf %19, %21 : vector<2x16x16xf32>
    %c0_6 = arith.constant 0 : index
    %c0_7 = arith.constant 0 : index
    %c0_8 = arith.constant 0 : index
    %23 = vector.load %arg2[%c0_6, %c0_7, %c0_8] : memref<2x16x16xf32, #tpu.memory_space<vmem>>, vector<2x16x16xf32>
    tpu.vector_store %arg2[%c0_6, %c0_7, %c0_8], %22 {strides = array<i32>} : memref<2x16x16xf32, #tpu.memory_space<vmem>>, vector<2x16x16xf32>,
    return
  }
  func.func @transform_0(%arg0: i32) -> (i32, i32, i32) {
    %c0_i32 = arith.constant 0 : i32
    %c0_i32_0 = arith.constant 0 : i32
    %c0_i32_1 = arith.constant 0 : i32
    return %arg0, %c0_i32, %c0_i32_0 : i32, i32, i32
  }
  func.func @transform_1(%arg0: i32) -> (i32, i32, i32) {
    %c0_i32 = arith.constant 0 : i32
    %c0_i32_0 = arith.constant 0 : i32
    %c0_i32_1 = arith.constant 0 : i32
    return %arg0, %c0_i32, %c0_i32_0 : i32, i32, i32
  }
}

</mosaic_0001>

<bundles_post_ra>
// kernel: tpu_custom_call.1
= control target key start
LH: loop header
LB: loop body
LE: loop exit
PB: predicated region body
PF: predicated region fallthrough
CT: control target
= control target key end

     0   :  { %6 = vsyncpa [#allocation3], 0  ;;  %s810_s0 = inlined_call_operand.hbm [shape: f32[8,16,16], index: 0, kind: input, shape index: {}]   ;;  %s811_s1 = inlined_call_operand.hbm [shape: f32[8,16,16], index: 1, kind: output, shape index: {}]  }
   0x1   :  { %8 = vsyncpa [#allocation3 + $0x1], 0 }
   0x2   :  { %9 = vsyncpa [#allocation4], 0 }
   0x3   :  { %11 = vsyncpa [#allocation4 + $0x1], 0  ;;  %s596_s6 = smov 0   ;;  %s598_s7 = smov 0  }
   0x4   :  { %s600_s8 = smov 0   ;;  %s602_s9 = smov 0  }
   0x5 LB: > { %s617_s10 = sadd.s32 4294967295, %s574_s9   ;;  %s404_s11 = sadd.s32 4294967294, %s574_s9   ;;  %s574_s9 = sphi %s602_s9, %s823_s9   ;;  %s570_s8 = sphi %s600_s8, %s822_s8   ;;  %s566_s7 = sphi %s598_s7, %s821_s7   ;;  %s562_s6 = sphi %s596_s6, %s820_s6  }
   0x6   : > { %s621_s12 = sadd.s32 1, %s574_s9   ;;  %s24_s13 = sadd.s32 1, %s570_s8 }
   0x7   : > { %s21_s14 = ssub.s32 %s574_s9, %s621_s12  ;;  %p31_p0 = scmp.ne.s32.totalorder %s570_s8, %s566_s7 }
   0x8   : > { %p22_p1 = scmp.eq.s32.totalorder %s21_s14, 0  ;;  %p32_p2 = scmp.eq.s32.totalorder %s574_s9, 0 }
   0x9   : > { %p37_p3 = scmp.ne.s32.totalorder %s566_s7, %s562_s6  ;;  %p38_p4 = scmp.eq.s32.totalorder %s617_s10, 0 }
   0xa   : > { %s633_s15 = scalar_select %p22_p1, %s570_s8, %s24_s13  }
   0xb   : > { %p635_p5 = por %p32_p2, %p31_p0  ;;  %p639_p6 = por %p38_p4, %p37_p3 }
   0xc   : > { %p61_p7 = scmp.eq.s32.totalorder %s617_s10, 3  ;;  %p67_p8 = scmp.eq.s32.totalorder %s404_s11, 3 }
   0xd   : > { %p436_p9 = scmp.lt.s32.totalorder %s574_s9, 4  ;;  %s87_s20 = sand.u32 1, %s570_s8  }
   0xe   : > { %p645_p10 = por %p61_p7, %p31_p0  ;;  %p649_p11 = por %p67_p8, %p37_p3 }
   0xf   : > { %s421_s21 = sshll.u32 %s574_s9, 9  ;;  %s407_s22 = sshll.u32 %s87_s20, 5 }
  0x10   : > { %s815_s18 = scalar_select %p645_p10, 1, 0 }
  0x11   : > { %s816_s19 = scalar_select %p649_p11, 1, 0 }
  0x12   : > { %s658_s25 = scalar_lea.hbm %s810_s0, %s421_s21  ;;  %s91_s26 = scalar_lea.vmem [#allocation2], %s407_s22 }
  0x13   : > { %s99_s27 = sshll.u32 %s91_s26, 4  ;;  %p662_p12 = pnand %p436_p9, %p635_p5  ;;  %s666_s27 = int_to_ptr.vmem [resolvable:$true] %s99_s27 }
  0x14   : > { %s668_s29 = scalar_lea.sflag [#allocation3], %s87_s20  ;;  %s478_s30 = scalar_lea.hbm %s658_s25, 512 }
  0x15   : > { %p479_p13 = scmp.ne.s32.totalorder %s658_s25, %s478_s30  ;;  %p480_p0 = pneg %p662_p12 }
  0x16   : > { %s483_s4 = scalar_lea.hbm %s810_s0, 2048  ;;  %p484_p3 = scmp.lt.u32.totalorder %s658_s25, %s810_s0 }
  0x17   : > { %p481_p1 = pnand %p480_p0, %p479_p13  ;;  %p485_p4 = scmp.lt.u32.totalorder %s483_s4, %s478_s30 }
  0x18   : > { %p487_p7 = scmp.lt.u32.totalorder %s478_s30, %s658_s25 }
  0x19   : > { %p482_p2 = pneg %p481_p1  ;;  %p486_p5 = por %p485_p4, %p484_p3 }
  0x1b   : > { %p488_p8 = por %p487_p7, %p486_p5 }
  0x1d   : > { %p489_p9 = pnand %p488_p8, %p482_p2 }
  0x1f   : > { %492 = shalt.err (!%p489_p9)
}
  0x20   : > { %s493_s13 = scalar_lea.vmem %s666_s27, 512  ;;  %s576_s14 = smov [#allocation2]  }
  0x21   : > { %p494_p13 = scmp.ne.s32.totalorder %s666_s27, %s493_s13  ;;  %s498_s16 = sshll.u32 %s576_s14, 4  ;;  %s499_s16 = int_to_ptr.vmem [resolvable:$false] %s498_s16 }
  0x22   : > { %s500_s20 = scalar_lea.vmem %s499_s16, 1024  ;;  %p501_p10 = scmp.lt.s32.totalorder %s666_s27, %s499_s16 }
  0x23   : > { %p496_p1 = pnand %p494_p13, %p480_p0  ;;  %p502_p3 = scmp.lt.s32.totalorder %s500_s20, %s493_s13 }
  0x25   : > { %p497_p11 = pneg %p496_p1  ;;  %p503_p4 = por %p502_p3, %p501_p10 }
  0x27   : > { %p504_p5 = pnand %p503_p4, %p497_p11 }
  0x29   : > { %507 = shalt.err (!%p504_p5)
}
  0x2a   : > { %s577_s21 = smov 128   ;;  %s578_s22 = smov 8  }
  0x2b   : > { %431 = dma.hbm_to_vmem [thread:$0]  (!%p662_p12), %s658_s25, 512, %s666_s27, %s668_s29, %s577_s21, %s577_s21, %s578_s22  }
  0x2c   : > { %p411_p0 = scmp.ge.s32.totalorder %s574_s9, 1  ;;  %p107_p2 = scmp.lt.s32.totalorder %s574_s9, 5 }
  0x2e   : > { %p108_p7 = pnand %p411_p0, %p107_p2 }
  0x2f   : > { %s699_s23 = sand.u32 (!%p108_p7), 1, %s566_s7  }
  0x30   : > { %111 = sbr.rel (%p108_p7) target bundleno = 350 (0x15e), region = 24  ;;  %s412_s24 = sshll.u32 (!%p108_p7), %s699_s23, 5 }
  0x31   : > { %s114_s26 = scalar_lea.sflag (!%p108_p7), [#allocation3], %s699_s23  ;;  %s117_s30 = scalar_lea.vmem (!%p108_p7), [#allocation2], %s412_s24 }
  0x37   : > { %553 = dma.done.wait (%p639_p6), %s114_s26, 512  }
  0x38   : > { %555 = vsyncadd (%p639_p6), %s114_s26, 4294966784  ;;  %v709_v0 = vld [vmem:[%s117_s30 + $0x10] sm:$0xff]  ;;  %v711_v1 = vld [vmem:[%s117_s30] sm:$0xff]  ;;  %s579_s25 = smov 127   ;;  %s580_s17 = smov 1   ;;  %vm182_vm0 = vcmask 7168  }
  0x39   : > { %150 = vrot.lane.b32.xlu1 %v709_v0, %s579_s25  ;;  %146 = vrot.lane.b32.xlu0 %v711_v1, %s579_s25  ;;  %v717_v2 = vld [vmem:[%s117_s30 + $0x18] sm:$0xff]  ;;  %v719_v3 = vld [vmem:[%s117_s30 + $0x8] sm:$0xff]  ;;  %s581_s27 = smov 3   ;;  %vm187_vm1 = vcmask 138240   ;;  %s582_s28 = smov 126   ;;  %vm236_vm2 = vcmask 1040384  }
  0x3a   : > { %vm261_vm3 = vcmask 1046528   ;;  %vm280_vm4 = vcmask 1045504   ;;  %v303_v57 = vmul.f32 -0.5625, %v711_v1  ;;  %vm311_vm5 = vcmask 130048   ;;  %s135_s29 = scalar_lea.vmem [#allocation5], %s412_s24  ;;  %s423_s2 = sshll.u32 %s617_s10, 9 }
  0x3b   : > { %s331_s3 = sshll.u32 %s135_s29, 4  ;;  %s763_s11 = scalar_lea.hbm %s811_s1, %s423_s2  ;;  %s765_s3 = int_to_ptr.vmem [resolvable:$true] %s331_s3 }
  0x3c   : > { %s317_s10 = scalar_lea.sflag [#allocation4], %s699_s23  ;;  %s508_s13 = scalar_lea.vmem %s765_s3, 512 }
  0x3d   : > { %152 = vrot.lane.b32.xlu1 %v717_v2, %s579_s25  ;;  %148 = vrot.lane.b32.xlu0 %v719_v3, %s579_s25  ;;  %p509_p6 = scmp.ne.s32.totalorder %s765_s3, %s508_s13  ;;  %p818_p10 = scmp.ne.s32.totalorder %s815_s18, 0 }
  0x3e   : > { %s583_s14 = smov [#allocation5]  }
  0x3f   : > { %p510_p11 = pnand %p509_p6, %p818_p10  ;;  %s512_s16 = sshll.u32 %s583_s14, 4  ;;  %s513_s16 = int_to_ptr.vmem [resolvable:$false] %s512_s16 }
  0x40   : > { %s514_s20 = scalar_lea.vmem %s513_s16, 1024  ;;  %p515_p8 = scmp.lt.s32.totalorder %s765_s3, %s513_s16 }
  0x41   : > { %160 = vrot.lane.b32.xlu1 %v719_v3, %s580_s17  ;;  %158 = vrot.lane.b32.xlu0 %v711_v1, %s580_s17  ;;  %p511_p12 = pneg %p510_p11  ;;  %p516_p9 = scmp.lt.s32.totalorder %s514_s20, %s508_s13 }
  0x43   : > { %p517_p13 = por %p516_p9, %p515_p8 }
  0x45   : > { %164 = vrot.lane.b32.xlu1 %v717_v2, %s580_s17  ;;  %162 = vrot.lane.b32.xlu0 %v709_v0, %s580_s17  ;;  %p518_p1 = pnand %p517_p13, %p511_p12 }
  0x49   : > { %172 = vrot.lane.b32.xlu1 %v719_v3, %s581_s27  ;;  %170 = vrot.lane.b32.xlu0 %v711_v1, %s581_s27 }
  0x4d   : > { %176 = vrot.lane.b32.xlu1 %v717_v2, %s581_s27  ;;  %174 = vrot.lane.b32.xlu0 %v709_v0, %s581_s27 }
  0xab   : > { %v151_v4 = vpop.permute.xlu1 %150  ;;  %v147_v5 = vpop.permute.xlu0 %146 }
  0xaf   : > { %v153_v6 = vpop.permute.xlu1 %152  ;;  %v149_v7 = vpop.permute.xlu0 %148 }
  0xb3   : > { %v161_v8 = vpop.permute.xlu1 %160  ;;  %v159_v9 = vpop.permute.xlu0 %158 }
  0xb4   : > { %v184_v12 = vsel %vm182_vm0, %v149_v7, %v161_v8  ;;  %v183_v13 = vsel %vm182_vm0, %v147_v5, %v159_v9  ;;  %v304_v5 = vmul.f32 -0.5625, %v719_v3 }
  0xb7   : > { %v165_v10 = vpop.permute.xlu1 %164  ;;  %v163_v11 = vpop.permute.xlu0 %162 }
  0xb8   : > { %v186_v18 = vsel %vm182_vm0, %v153_v6, %v165_v10  ;;  %v185_v19 = vsel %vm182_vm0, %v151_v4, %v163_v11 }
  0xbb   : > { %v173_v14 = vpop.permute.xlu1 %172  ;;  %v171_v15 = vpop.permute.xlu0 %170 }
  0xbc   : > { %v189_v16 = vsel %vm187_vm1, %v184_v12, %v173_v14  ;;  %v188_v17 = vsel %vm187_vm1, %v183_v13, %v171_v15 }
  0xbd   : > { %198 = vrot.lane.b32.xlu1 %v189_v16, %s579_s25  ;;  %196 = vrot.lane.b32.xlu0 %v188_v17, %s579_s25 }
  0xbf   : > { %v177_v20 = vpop.permute.xlu1 %176  ;;  %v175_v21 = vpop.permute.xlu0 %174 }
  0xc0   : > { %v191_v22 = vsel %vm187_vm1, %v186_v18, %v177_v20  ;;  %v190_v23 = vsel %vm187_vm1, %v185_v19, %v175_v21 }
  0xc1   : > { %202 = vrot.lane.b32.xlu1 %v191_v22, %s579_s25  ;;  %200 = vrot.lane.b32.xlu0 %v190_v23, %s579_s25 }
  0xc5   : > { %214 = vrot.lane.b32.xlu1 %v189_v16, %s582_s28  ;;  %212 = vrot.lane.b32.xlu0 %v188_v17, %s582_s28 }
  0xc9   : > { %218 = vrot.lane.b32.xlu1 %v191_v22, %s582_s28  ;;  %216 = vrot.lane.b32.xlu0 %v190_v23, %s582_s28 }
 0x12f   : > { %v199_v24 = vpop.permute.xlu1 %198  ;;  %v197_v25 = vpop.permute.xlu0 %196 }
 0x130   : > { %v209_v28 = vadd.f32 %v199_v24, %v189_v16  ;;  %v208_v29 = vadd.f32 %v197_v25, %v188_v17  ;;  %v305_v24 = vmul.f32 -0.5625, %v709_v0  ;;  %v306_v25 = vmul.f32 -0.5625, %v717_v2 }
 0x133   : > { %v203_v26 = vpop.permute.xlu1 %202  ;;  %v201_v27 = vpop.permute.xlu0 %200 }
 0x134   : > { %v211_v34 = vadd.f32 %v203_v26, %v191_v22  ;;  %v210_v39 = vadd.f32 %v201_v27, %v190_v23 }
 0x137   : > { %v215_v30 = vpop.permute.xlu1 %214  ;;  %v213_v31 = vpop.permute.xlu0 %212 }
 0x138   : > { %v225_v32 = vadd.f32 %v215_v30, %v209_v28  ;;  %v224_v33 = vadd.f32 %v213_v31, %v208_v29 }
 0x13a   : > { %v238_v35 = vrot.slane %v225_v32, 7  ;;  %v249_v36 = vrot.slane %v225_v32, 5  ;;  %v230_v37 = vrot.slane %v224_v33, 1  ;;  %v237_v38 = vrot.slane %v224_v33, 7 }
 0x13b   : > { %v219_v40 = vpop.permute.xlu1 %218  ;;  %v217_v45 = vpop.permute.xlu0 %216 }
 0x13c   : > { %v255_v41 = vsel %vm236_vm2, %v238_v35, %v249_v36  ;;  %v239_v42 = vsel %vm236_vm2, %v237_v38, %v238_v35  ;;  %v253_v43 = vsel %vm236_vm2, %v230_v37, %v237_v38  ;;  %v227_v44 = vadd.f32 %v219_v40, %v211_v34 }
 0x13d   : > { %v265_v46 = vrot.slane %v255_v41, 1  ;;  %v284_v47 = vrot.slane %v255_v41, 2  ;;  %v262_v48 = vrot.slane %v253_v43, 1  ;;  %v263_v49 = vrot.slane %v239_v42, 1 }
 0x13e   : > { %v281_v50 = vrot.slane %v253_v43, 2  ;;  %v282_v51 = vrot.slane %v239_v42, 2  ;;  %v241_v52 = vrot.slane %v227_v44, 7  ;;  %v250_v53 = vrot.slane %v227_v44, 5 }
 0x13f   : > { %v264_v54 = vsel %vm261_vm3, %v262_v48, %v263_v49  ;;  %v266_v55 = vsel %vm261_vm3, %v263_v49, %v265_v46  ;;  %v226_v56 = vadd.f32 %v217_v45, %v210_v39 }
 0x140   : > { %v276_v58 = vadd.f32 %v264_v54, %v253_v43  ;;  %v277_v59 = vadd.f32 %v266_v55, %v239_v42  ;;  %v283_v60 = vsel %vm280_vm4, %v281_v50, %v282_v51  ;;  %v285_v61 = vsel %vm280_vm4, %v282_v51, %v284_v47 }
 0x141   : > { %v256_v62 = vsel %vm236_vm2, %v241_v52, %v250_v53  ;;  %v231_v63 = vrot.slane %v226_v56, 1  ;;  %v240_v4 = vrot.slane %v226_v56, 7 }
 0x142   : > { %v295_v6 = vadd.f32 %v283_v60, %v276_v58  ;;  %v296_v7 = vadd.f32 %v285_v61, %v277_v59  ;;  %v270_v8 = vrot.slane %v256_v62, 1  ;;  %v289_v9 = vrot.slane %v256_v62, 2 }
 0x143   : > { %v242_v10 = vsel %vm236_vm2, %v240_v4, %v241_v52  ;;  %v254_v1 = vsel %vm236_vm2, %v231_v63, %v240_v4 }
 0x144   : > { %v299_v11 = vmul.f32 0.0625, %v295_v6  ;;  %v300_v12 = vmul.f32 0.0625, %v296_v7  ;;  %v267_v13 = vrot.slane %v254_v1, 1  ;;  %v268_v14 = vrot.slane %v242_v10, 1 }
 0x145   : > { %v286_v15 = vrot.slane %v254_v1, 2  ;;  %v287_v16 = vrot.slane %v242_v10, 2 }
 0x146   : > { %v307_v17 = vadd.f32 %v303_v57, %v299_v11  ;;  %v308_v18 = vadd.f32 %v304_v5, %v300_v12  ;;  %v269_v3 = vsel %vm261_vm3, %v267_v13, %v268_v14  ;;  %v271_v19 = vsel %vm261_vm3, %v268_v14, %v270_v8 }
 0x147   : > { %v278_v20 = vadd.f32 %v269_v3, %v254_v1  ;;  %v279_v21 = vadd.f32 %v271_v19, %v242_v10  ;;  %v288_v22 = vsel %vm280_vm4, %v286_v15, %v287_v16  ;;  %v290_v23 = vsel %vm280_vm4, %v287_v16, %v289_v9 }
 0x148   : > { %312 = vst.msk [vmem:[%s135_s29] sm:$0xff] %vm311_vm5, %v307_v17  ;;  %313 = vst.msk [vmem:[%s135_s29 + $0x8] sm:$0xff] %vm311_vm5, %v308_v18 }
 0x149   : > { %v297_v26 = vadd.f32 %v288_v22, %v278_v20  ;;  %v298_v27 = vadd.f32 %v290_v23, %v279_v21 }
 0x14b   : > { %v301_v28 = vmul.f32 0.0625, %v297_v26  ;;  %v302_v29 = vmul.f32 0.0625, %v298_v27 }
 0x14d   : > { %v309_v0 = vadd.f32 %v305_v24, %v301_v28  ;;  %v310_v30 = vadd.f32 %v306_v25, %v302_v29 }
 0x14f   : > { %314 = vst.msk [vmem:[%s135_s29 + $0x10] sm:$0xff] %vm311_vm5, %v309_v0  ;;  %315 = vst.msk [vmem:[%s135_s29 + $0x18] sm:$0xff] %vm311_vm5, %v310_v30 }
 0x150   : > { %521 = shalt.err (!%p518_p1)
}
 0x151   : > { %s522_s21 = scalar_lea.hbm %s763_s11, 512  ;;  %s526_s26 = scalar_lea.hbm %s811_s1, 2048 }
 0x152   : > { %p523_p3 = scmp.ne.s32.totalorder %s763_s11, %s522_s21  ;;  %p527_p0 = scmp.lt.u32.totalorder %s763_s11, %s811_s1 }
 0x153   : > { %p528_p2 = scmp.lt.u32.totalorder %s526_s26, %s522_s21  ;;  %p530_p6 = scmp.lt.u32.totalorder %s522_s21, %s763_s11 }
 0x154   : > { %p524_p4 = pnand %p523_p3, %p818_p10 }
 0x155   : > { %p529_p7 = por %p528_p2, %p527_p0 }
 0x156   : > { %p525_p5 = pneg %p524_p4 }
 0x157   : > { %p531_p11 = por %p530_p6, %p529_p7 }
 0x159   : > { %p532_p12 = pnand %p531_p11, %p525_p5 }
 0x15b   : > { %535 = shalt.err (!%p532_p12)
}
 0x15c   : > { %s584_s17 = smov 128   ;;  %s585_s27 = smov 8  }
 0x15d   : > { %426 = dma.vmem_to_hbm [thread:$0]  (%p818_p10), %s765_s3, 512, %s763_s11, %s317_s10, %s584_s17, %s584_s17, %s585_s27  }
 0x15e PF: > { %p437_p8 = scmp.ge.s32.totalorder %s574_s9, 2  ;;  %s346_s28 = sand.u32 1, %s562_s6  }
 0x15f   : > { %p819_p9 = scmp.ne.s32.totalorder %s816_s19, 0  ;;  %s347_s29 = scalar_lea.sflag [#allocation4], %s346_s28 }
 0x161   : > { %p433_p13 = pnand %p437_p8, %p819_p9 }
 0x163   : > { %557 = dma.done.wait (!%p433_p13), %s347_s29, 512  }
 0x164   : > { %559 = vsyncadd (!%p433_p13), %s347_s29, 4294966784  ;;  %p14_p1 = scmp.ge.s32.totalorder %s621_s12, 6   ;;  %s820_s6 = smov %s566_s7 }
 0x165   : > { %s821_s7 = smov %s570_s8  ;;  %s822_s8 = smov %s633_s15 }
 0x166   : > { %s823_s9 = smov %s621_s12  ;;  %16 = sbr.rel (!%p14_p1) target bundleno = 5 (0x5), region = 69 }
 0x16d   :  { %352 = vsyncpa [#allocation3], 1 }
 0x16e   :  { %354 = vsyncpa [#allocation3 + $0x1], 1 }
 0x16f   :  { %355 = vsyncpa [#allocation4], 1 }
 0x170   :  { %357 = vsyncpa [#allocation4 + $0x1], 1 }

</bundles_post_ra>
